<compile_context>
chip_gen: v6e
topology: v6e:2x2x1
jax: 0.10.0
libtpu: 0.0.40
codegen_flags: <defaults>
</compile_context>

<pallas_src>
import functools
import math

import jax
import jax.numpy as jnp
from jax.experimental import pallas as pl
from jax.experimental.pallas import tpu as pltpu


# --------------------------------------------------------------------------
# Kernel bodies (single invocation, whole batch resident in VMEM)
# --------------------------------------------------------------------------
def _sdpa_body(q_ref, k_ref, v_ref, bias_ref, out_ref, attn_ref, scale):
    q = q_ref[...]                                   # [B, Lq, Dk]
    k = k_ref[...]                                   # [B, Lk, Dk]
    v = v_ref[...]                                   # [B, Lk, Dv]

    # scores = (q @ k^T) * (1/sqrt(d_k)); contract Dk, keep batch dim.
    scores = jnp.einsum(
        "bqd,bkd->bqk", q, k,
        preferred_element_type=jnp.float32) * scale              # [B, Lq, Lk]

    if bias_ref is not None:
        # Additive bias: 0 where kept, -1e30 where masked out.
        # bias may be [B, Lq, Lk] or [Lq, Lk] (broadcast over batch).
        scores = scores + bias_ref[...]

    # Numerically stable softmax over the last dim.
    row_max = jnp.max(scores, axis=-1, keepdims=True)
    p = jnp.exp(scores - row_max)
    denom = jnp.sum(p, axis=-1, keepdims=True)
    attn = p * pl.reciprocal(denom, approx=False)                # [B, Lq, Lk]

    attn_ref[...] = attn.astype(attn_ref.dtype)

    # output = attn @ v  (dropout is identity in eval mode)
    out = jnp.einsum("bqk,bkd->bqd", attn, v.astype(jnp.float32),
                     preferred_element_type=jnp.float32)         # [B, Lq, Dv]
    out_ref[...] = out.astype(out_ref.dtype)


def _sdpa_kernel_unmasked(q_ref, k_ref, v_ref, out_ref, attn_ref, *, scale):
    _sdpa_body(q_ref, k_ref, v_ref, None, out_ref, attn_ref, scale)


def _sdpa_kernel_masked(q_ref, k_ref, v_ref, bias_ref, out_ref, attn_ref, *,
                        scale):
    _sdpa_body(q_ref, k_ref, v_ref, bias_ref, out_ref, attn_ref, scale)


# --------------------------------------------------------------------------
# Wrapper
# --------------------------------------------------------------------------
def scaled_dot_product_attention(q, k, v, attn_mask=None):
    """Eval-mode forward. Returns (outputs [B, Lq, Dv], attn [B, Lq, Lk]).

    attn_mask: optional, nonzero == masked out. Shape (B, Lq, Lk) (as in the
    PyTorch module) or (Lq, Lk) (shared across batch; saves B x mask DMA).
    """
    B, Lq, Dk = q.shape
    _, Lk, Dv = v.shape
    scale = 1.0 / math.sqrt(Dk)

    vmem = pl.BlockSpec(memory_space=pltpu.MemorySpace.VMEM)
    out_shape = [
        jax.ShapeDtypeStruct((B, Lq, Dv), q.dtype),
        jax.ShapeDtypeStruct((B, Lq, Lk), q.dtype),
    ]
    out_specs = [vmem, vmem]

    if attn_mask is None:
        kernel = functools.partial(_sdpa_kernel_unmasked, scale=scale)
        return pl.pallas_call(
            kernel,
            in_specs=[vmem, vmem, vmem],
            out_specs=out_specs,
            out_shape=out_shape,
        )(q, k, v)

    # Precompute the additive bias once on the host side of the kernel
    # (0 where kept, -1e30 where masked) -> no compare+select in-kernel.
    bias = jnp.where(attn_mask != 0, jnp.float32(-1e30), jnp.float32(0.0))
    kernel = functools.partial(_sdpa_kernel_masked, scale=scale)
    return pl.pallas_call(
        kernel,
        in_specs=[vmem, vmem, vmem, vmem],
        out_specs=out_specs,
        out_shape=out_shape,
    )(q, k, v, bias)


# --------------------------------------------------------------------------
# Pure-JAX reference (correctness check)
# --------------------------------------------------------------------------
def _reference(q, k, v, attn_mask=None):
    scores = jnp.einsum("bqd,bkd->bqk", q, k) / math.sqrt(q.shape[-1])
    if attn_mask is not None:
        scores = scores + jnp.where(attn_mask != 0, jnp.float32(-1e30),
                                    jnp.float32(0.0))
    attn = jax.nn.softmax(scores, axis=-1)
    return jnp.einsum("bqk,bkd->bqd", attn, v), attn


# --------------------------------------------------------------------------
# Main
# --------------------------------------------------------------------------
if __name__ == "__main__":
    B, Lq, Lk, Dk, Dv = 2, 8, 8, 32, 32

    key = jax.random.PRNGKey(0)
    kq, kk, kv = jax.random.split(key, 3)
    q = jax.random.normal(kq, (B, Lq, Dk), jnp.float32)
    k = jax.random.normal(kk, (B, Lk, Dk), jnp.float32)
    v = jax.random.normal(kv, (B, Lk, Dv), jnp.float32)

    # Causal mask: nonzero == masked out (as in masked_fill_).
    causal2d = (jnp.arange(Lk)[None, :] > jnp.arange(Lq)[:, None]).astype(jnp.int32)
    attn_mask = jnp.broadcast_to(causal2d, (B, Lq, Lk))

    sdpa = jax.jit(scaled_dot_product_attention)

    # 1) Masked path, full (B, Lq, Lk) mask (faithful to the PyTorch spec).
    out_m, attn_m = sdpa(q, k, v, attn_mask)
    jax.block_until_ready((out_m, attn_m))
    ref_out_m, ref_attn_m = _reference(q, k, v, attn_mask)

    # 2) Masked path, shared 2-D mask (de-duplicated mask DMA).
    out_m2, attn_m2 = sdpa(q, k, v, causal2d)
    jax.block_until_ready((out_m2, attn_m2))

    # 3) Unmasked path.
    out_u, attn_u = sdpa(q, k, v, None)
    jax.block_until_ready((out_u, attn_u))
    ref_out_u, ref_attn_u = _reference(q, k, v, None)

    assert out_m.shape == (B, Lq, Dv) and attn_m.shape == (B, Lq, Lk)
    assert out_u.shape == (B, Lq, Dv) and attn_u.shape == (B, Lq, Lk)
    assert jnp.allclose(out_m, ref_out_m, atol=1e-5, rtol=1e-5)
    assert jnp.allclose(attn_m, ref_attn_m, atol=1e-5, rtol=1e-5)
    assert jnp.allclose(out_m2, ref_out_m, atol=1e-5, rtol=1e-5)
    assert jnp.allclose(attn_m2, ref_attn_m, atol=1e-5, rtol=1e-5)
    assert jnp.allclose(out_u, ref_out_u, atol=1e-5, rtol=1e-5)
    assert jnp.allclose(attn_u, ref_attn_u, atol=1e-5, rtol=1e-5)

    print("KERNEL_OK")
</pallas_src>

<mosaic_0001>
module attributes {stable_mosaic.version = 11 : i64} {
  func.func @_sdpa_kernel_masked(%arg0: memref<2x8x32xf32, #tpu.memory_space<vmem>>, %arg1: memref<2x8x32xf32, #tpu.memory_space<vmem>>, %arg2: memref<2x8x32xf32, #tpu.memory_space<vmem>>, %arg3: memref<2x8x8xf32, #tpu.memory_space<vmem>>, %arg4: memref<2x8x32xf32, #tpu.memory_space<vmem>>, %arg5: memref<2x8x8xf32, #tpu.memory_space<vmem>>) attributes {dimension_semantics = [], scalar_prefetch = 0 : i64, scratch_operands = 0 : i64, tpu.core_type = #tpu.core_type<tc>} {
    %c0 = arith.constant 0 : index
    %c0_0 = arith.constant 0 : index
    %c0_1 = arith.constant 0 : index
    %0 = vector.load %arg0[%c0, %c0_0, %c0_1] : memref<2x8x32xf32, #tpu.memory_space<vmem>>, vector<2x8x32xf32>
    %c0_2 = arith.constant 0 : index
    %c0_3 = arith.constant 0 : index
    %c0_4 = arith.constant 0 : index
    %1 = vector.load %arg1[%c0_2, %c0_3, %c0_4] : memref<2x8x32xf32, #tpu.memory_space<vmem>>, vector<2x8x32xf32>
    %c0_5 = arith.constant 0 : index
    %c0_6 = arith.constant 0 : index
    %c0_7 = arith.constant 0 : index
    %2 = vector.load %arg2[%c0_5, %c0_6, %c0_7] : memref<2x8x32xf32, #tpu.memory_space<vmem>>, vector<2x8x32xf32>
    "tpu.trace_start"() <{level = 10 : i32, message = "bqd,bkd->bqk"}> : () -> ()
    %cst = arith.constant dense<0.000000e+00> : vector<2x8x8xf32>
    %3 = tpu.matmul %0, %1, %cst {dimension_numbers = #tpu.dot_dimension_numbers<[2], [2], [1], [1], [0, 0, 0, 1, 1, 1], [0], [0]>} : vector<2x8x32xf32>, vector<2x8x32xf32>, vector<2x8x8xf32> -> vector<2x8x8xf32>
    "tpu.trace_stop"() : () -> ()
    %cst_8 = arith.constant 0.176776692 : f32
    %4 = vector.broadcast %cst_8 : f32 to vector<2x8x8xf32>
    %5 = arith.mulf %3, %4 : vector<2x8x8xf32>
    %c0_9 = arith.constant 0 : index
    %c0_10 = arith.constant 0 : index
    %c0_11 = arith.constant 0 : index
    %6 = vector.load %arg3[%c0_9, %c0_10, %c0_11] : memref<2x8x8xf32, #tpu.memory_space<vmem>>, vector<2x8x8xf32>
    %7 = arith.addf %5, %6 : vector<2x8x8xf32>
    %cst_12 = arith.constant dense<0xFF800000> : vector<2x8xf32>
    %8 = vector.multi_reduction <maximumf>, %7, %cst_12 [2] : vector<2x8x8xf32> to vector<2x8xf32>
    %9 = vector.shape_cast %8 : vector<2x8xf32> to vector<2x8x1xf32>
    %10 = vector.broadcast %9 : vector<2x8x1xf32> to vector<2x8x8xf32>
    %11 = arith.subf %7, %10 : vector<2x8x8xf32>
    %12 = math.exp %11 : vector<2x8x8xf32>
    %cst_13 = arith.constant dense<0.000000e+00> : vector<2x8xf32>
    %13 = vector.multi_reduction <add>, %12, %cst_13 [2] : vector<2x8x8xf32> to vector<2x8xf32>
    %14 = vector.shape_cast %13 : vector<2x8xf32> to vector<2x8x1xf32>
    %15 = tpu.reciprocal %14 : vector<2x8x1xf32> -> vector<2x8x1xf32>
    %16 = vector.broadcast %15 : vector<2x8x1xf32> to vector<2x8x8xf32>
    %17 = arith.mulf %12, %16 : vector<2x8x8xf32>
    %c0_14 = arith.constant 0 : index
    %c0_15 = arith.constant 0 : index
    %c0_16 = arith.constant 0 : index
    %18 = vector.load %arg5[%c0_14, %c0_15, %c0_16] : memref<2x8x8xf32, #tpu.memory_space<vmem>>, vector<2x8x8xf32>
    tpu.vector_store %arg5[%c0_14, %c0_15, %c0_16], %17 {strides = array<i32>} : memref<2x8x8xf32, #tpu.memory_space<vmem>>, vector<2x8x8xf32>,
    "tpu.trace_start"() <{level = 10 : i32, message = "bqk,bkd->bqd"}> : () -> ()
    %cst_17 = arith.constant dense<0.000000e+00> : vector<2x8x32xf32>
    %19 = tpu.matmul %17, %2, %cst_17 {dimension_numbers = #tpu.dot_dimension_numbers<[2], [1], [1], [2], [0, 0, 0, 1, 1, 2], [0], [0]>} : vector<2x8x8xf32>, vector<2x8x32xf32>, vector<2x8x32xf32> -> vector<2x8x32xf32>
    "tpu.trace_stop"() : () -> ()
    %c0_18 = arith.constant 0 : index
    %c0_19 = arith.constant 0 : index
    %c0_20 = arith.constant 0 : index
    %20 = vector.load %arg4[%c0_18, %c0_19, %c0_20] : memref<2x8x32xf32, #tpu.memory_space<vmem>>, vector<2x8x32xf32>
    tpu.vector_store %arg4[%c0_18, %c0_19, %c0_20], %19 {strides = array<i32>} : memref<2x8x32xf32, #tpu.memory_space<vmem>>, vector<2x8x32xf32>,
    return
  }
}

</mosaic_0001>

<bundles_post_ra>
// kernel: scaled_dot_product_attention.1
= control target key start
LH: loop header
LB: loop body
LE: loop exit
PB: predicated region body
PF: predicated region fallthrough
CT: control target
= control target key end

     0   :  { %11 = vsyncpa [#allocation3], 0  ;;  %s608_s0 = inlined_call_operand.vmem [shape: f32[2,8,32], index: 0, kind: input, shape index: {}]   ;;  %s609_s1 = inlined_call_operand.vmem [shape: f32[2,8,32], index: 1, kind: input, shape index: {}]   ;;  %s610_s2 = inlined_call_operand.hbm [shape: f32[2,8,32], index: 2, kind: input, shape index: {}]   ;;  %s611_s3 = inlined_call_operand.vmem [shape: f32[2,8,8], index: 3, kind: input, shape index: {}]   ;;  %s612_s4 = inlined_call_operand.hbm [shape: f32[2,8,32], index: 4, kind: output, shape index: {0}]   ;;  %s613_s5 = inlined_call_operand.hbm [shape: f32[2,8,8], index: 5, kind: output, shape index: {1}]  }
   0x1   :  { %12 = vsyncpa [#allocation4], 0 }
   0x2   :  { %13 = vsyncpa [#allocation7], 0  ;;  %s521_s18 = smov [#allocation2]  }
   0x3   :  { %s23_s19 = sshll.u32 %s521_s18, 4  ;;  %s24_s19 = int_to_ptr.vmem [resolvable:$true] %s23_s19 }
   0x4   :  { %s463_s20 = scalar_lea.vmem %s24_s19, 256  ;;  %p468_p1 = scmp.lt.s32.totalorder %s24_s19, %s24_s19 }
   0x5   :  { %p464_p0 = scmp.ne.s32.totalorder %s24_s19, %s463_s20  ;;  %p469_p2 = scmp.lt.s32.totalorder %s463_s20, %s463_s20 }
   0x7   :  { %p470_p3 = por %p469_p2, %p468_p1 }
   0x9   :  { %p471_p4 = pnand %p470_p3, %p464_p0 }
   0xb   :  { %474 = shalt.err (!%p471_p4)
}
   0xc   :  { %s522_s21 = smov 128   ;;  %s523_s22 = smov 8  }
   0xd   :  { %29 = dma.hbm_to_vmem [thread:$0]  %s610_s2, 256, %s24_s19, [#allocation3], %s522_s21, %s522_s21, %s523_s22  }
   0xe   :  { %515 = dma.done.wait [#allocation3], 256  }
   0xf   :  { %516 = vsyncadd [#allocation3], 4294967040  ;;  %v524_v0 = vmov 0.0   ;;  %vm525_vm0 = vmmov 0   ;;  %vm41_vm1 = vcmask 261120   ;;  %v37_v1 = vld [vmem:[%s609_s1] sm:$0xff] }
  0x10   :  { %420 = vmatprep.subr.mxu0 %v524_v0  ;;  %425 = vmatprep.subr.mxu1 %v524_v0  ;;  %v38_v2 = vld [vmem:[%s609_s1 + $0x8] sm:$0xff]  ;;  %v35_v3 = vld [vmem:[%s608_s0] sm:$0xff]  ;;  %vm200_vm2 = vcmask 64512  }
  0x11   :  { %422 = vmatprep.mubr.msk.f32.mxu0 %vm525_vm0, %v524_v0  ;;  %427 = vmatprep.mubr.msk.f32.mxu1 %vm525_vm0, %v524_v0  ;;  %v36_v4 = vld [vmem:[%s608_s0 + $0x8] sm:$0xff]  ;;  %v196_v7 = vld [vmem:[%s611_s3] sm:$0xff]  ;;  %s526_s0 = smov [#allocation6]  }
  0x12   :  { %421 = vmatpush3.xpose.msk.msra.mxu0 %vm41_vm1, %v37_v1  ;;  %426 = vmatpush3.xpose.msk.msra.mxu1 %vm41_vm1, %v38_v2  ;;  %v197_v8 = vld [vmem:[%s611_s3 + $0x8] sm:$0xff]  ;;  %v39_v27 = vld [vmem:[#allocation2] sm:$0xff]  ;;  %s390_s3 = sshll.u32 %s526_s0, 4  ;;  %s391_s3 = int_to_ptr.vmem [resolvable:$true] %s390_s3 }
  0x13   :  { %430 = vmatprep.subr.mxu0 %v524_v0  ;;  %435 = vmatprep.subr.mxu1 %v524_v0  ;;  %v40_v28 = vld [vmem:[#allocation2 + $0x8] sm:$0xff]  ;;  %s475_s10 = scalar_lea.vmem %s391_s3, 256  ;;  %p480_p6 = scmp.lt.s32.totalorder %s391_s3, %s391_s3 }
  0x14   :  { %p476_p5 = scmp.ne.s32.totalorder %s391_s3, %s475_s10  ;;  %p481_p7 = scmp.lt.s32.totalorder %s475_s10, %s475_s10 }
  0x15   :  { %423 = vmatmul.mubr.msk.f32.vlgmr.msra.gmra.mxu0 %vm41_vm1, %v35_v3  ;;  %428 = vmatmul.mubr.msk.f32.vlgmr.msra.gmra.mxu1 %vm41_vm1, %v36_v4 }
  0x16   :  { %432 = vmatprep.mubr.msk.f32.mxu0 %vm525_vm0, %v524_v0  ;;  %437 = vmatprep.mubr.msk.f32.mxu1 %vm525_vm0, %v524_v0  ;;  %p482_p8 = por %p481_p7, %p480_p6 }
  0x17   :  { %431 = vmatpush3.msra.mxu0 %v39_v27  ;;  %436 = vmatpush3.msra.mxu1 %v40_v28 }
  0x18   :  { %p483_p9 = pnand %p482_p8, %p476_p5 }
  0xd5   :  { %v114_v5 = vpop.f32.mrf.mxu0  ;;  %v190_v6 = vpop.f32.mrf.mxu1 }
  0xd6   :  { %v194_v9 = vmul.f32 0.17677669, %v114_v5  ;;  %v195_v10 = vmul.f32 0.17677669, %v190_v6 }
  0xd7   :  { %v424_v11 = vpop.f32.mrf.mxu0  ;;  %v429_v12 = vpop.f32.mrf.mxu1 }
  0xd8   :  { %v198_v13 = vadd.f32 %v196_v7, %v194_v9  ;;  %v199_v14 = vadd.f32 %v197_v8, %v195_v10 }
  0xda   :  { %v201_v15 = vsel %vm200_vm2, %v198_v13, -inf  ;;  %v204_v16 = vsel %vm200_vm2, %v199_v14, -inf }
  0xdb   :  { %202 = vmax.xlane.f32.xlu0 %v201_v15 }
  0xdf   :  { %205 = vmax.xlane.f32.xlu0 %v204_v16 }
 0x164   :  { %v203_v17 = vpop.xlane.xlu0 %202 }
 0x165   :  { %v207_v18 = vsub.f32 %v198_v13, %v203_v17 }
 0x167   :  { %v209_v19 = vmul.f32 1.442695, %v207_v18 }
 0x168   :  { %v206_v20 = vpop.xlane.xlu0 %205 }
 0x169   :  { %447 = vpow2.f32 %v209_v19  ;;  %v208_v21 = vsub.f32 %v199_v14, %v206_v20 }
 0x16b   :  { %v211_v22 = vmul.f32 1.442695, %v208_v21 }
 0x16d   :  { %449 = vpow2.f32 %v211_v22 }
 0x176   :  { %v448_v23 = vpop.eup %447 }
 0x177   :  { %v213_v24 = vsel %vm200_vm2, %v448_v23, 0.0 }
 0x178   :  { %214 = vadd.xlane.f32.xlu1 %v213_v24 }
 0x17a   :  { %v450_v25 = vpop.eup %449 }
 0x17b   :  { %v216_v26 = vsel %vm200_vm2, %v450_v25, 0.0 }
 0x17c   :  { %217 = vadd.xlane.f32.xlu1 %v216_v26 }
 0x201   :  { %v215_v29 = vpop.xlane.xlu1 %214 }
 0x202   :  { %451 = vrcp.f32 %v215_v29 }
 0x205   :  { %v218_v30 = vpop.xlane.xlu1 %217 }
 0x206   :  { %453 = vrcp.f32 %v218_v30 }
 0x20f   :  { %v452_v31 = vpop.eup %451 }
 0x210   :  { %v221_v32 = vmul.f32 %v452_v31, %v448_v23 }
 0x212   :  { %433 = vmatmul.mubr.msk.f32.vlgmr.msra.gmra.mxu0 %vm200_vm2, %v221_v32  ;;  %223 = vst.msk [vmem:[#allocation6] sm:$0xff] %vm200_vm2, %v221_v32 }
 0x213   :  { %v454_v33 = vpop.eup %453 }
 0x214   :  { %v222_v34 = vmul.f32 %v454_v33, %v450_v25 }
 0x216   :  { %438 = vmatmul.mubr.msk.f32.vlgmr.msra.gmra.mxu1 %vm200_vm2, %v222_v34  ;;  %224 = vst.msk [vmem:[#allocation6 + $0x8] sm:$0xff] %vm200_vm2, %v222_v34 }
 0x217   :  { %486 = shalt.err (!%p483_p9)
}
 0x218   :  { %396 = dma.vmem_to_hbm [thread:$0]  %s391_s3, 256, %s613_s5, [#allocation7], %s522_s21, %s522_s21, %s523_s22  }
 0x219   :  { %s527_s13 = smov [#allocation5]  }
 0x21a   :  { %s378_s14 = sshll.u32 %s527_s13, 4  ;;  %s379_s14 = int_to_ptr.vmem [resolvable:$true] %s378_s14 }
 0x21b   :  { %s495_s15 = scalar_lea.vmem %s379_s14, 256  ;;  %p500_p11 = scmp.lt.s32.totalorder %s379_s14, %s379_s14 }
 0x21c   :  { %p496_p10 = scmp.ne.s32.totalorder %s379_s14, %s495_s15  ;;  %p501_p12 = scmp.lt.s32.totalorder %s495_s15, %s495_s15 }
 0x21e   :  { %p502_p13 = por %p501_p12, %p500_p11 }
 0x220   :  { %p503_p0 = pnand %p502_p13, %p496_p10 }
 0x2d2   :  { %v294_v35 = vpop.f32.mrf.mxu0 }
 0x2d3   :  { %371 = vst.msk [vmem:[#allocation5] sm:$0xff] %vm41_vm1, %v294_v35 }
 0x2d4   :  { %v434_v36 = vpop.f32.mrf.mxu0 }
 0x2d6   :  { %v367_v37 = vpop.f32.mrf.mxu1 }
 0x2d7   :  { %372 = vst.msk [vmem:[#allocation5 + $0x8] sm:$0xff] %vm41_vm1, %v367_v37 }
 0x2d8   :  { %v439_v38 = vpop.f32.mrf.mxu1 }
 0x2d9   :  { %506 = shalt.err (!%p503_p0)
}
 0x2da   :  { %384 = dma.vmem_to_hbm [thread:$0]  %s379_s14, 256, %s612_s4, [#allocation4], %s522_s21, %s522_s21, %s523_s22  }
 0x2db   :  { %517 = dma.done.wait [#allocation4], 256  }
 0x2dc   :  { %518 = vsyncadd [#allocation4], 4294967040 }
 0x2dd   :  { %519 = dma.done.wait [#allocation7], 256  }
 0x2de   :  { %520 = vsyncadd [#allocation7], 4294967040 }
 0x2df   :  { %403 = vsyncpa [#allocation3], 1 }
 0x2e0   :  { %404 = vsyncpa [#allocation4], 1 }
 0x2e1   :  { %405 = vsyncpa [#allocation7], 1 }

</bundles_post_ra>
